<compile_context>
chip_gen: v5e
topology: v5e:2x2
jax: 0.10.0
libtpu: 0.0.40
codegen_flags: <defaults>
</compile_context>

<pallas_src>
import math
import functools

import numpy as np
import jax
import jax.numpy as jnp
from jax.experimental import pallas as pl
from jax.experimental.pallas import tpu as pltpu


def get_padding(kernel_size, dilation=1):
    return int((kernel_size * dilation - dilation) / 2)


_VMEM_LIMIT = 32 * 1024 * 1024   # safe on v5e/v6e/v7x; raise per-chip for prod sizes


# --------------------------------------------------------------------------- #
# Fused SBD stage kernel: a run of stride-1 MDC layers (sum of dilated convs  #
# -> 3-tap post conv -> LeakyReLU), optionally followed by the final 1-ch     #
# score conv.  Everything stays in VMEM; per-layer outputs are written to HBM #
# (fmaps) but never re-read.  The stride-3 decimation of strided layers is    #
# applied OUTSIDE (cheap XLA slice) on the last output of a stage.            #
# --------------------------------------------------------------------------- #
def _sbd_stage_kernel(*refs, n_layers, has_final, layer_meta, L, slope):
    n_in = 1 + 4 * n_layers + (2 if has_final else 0)
    in_refs, out_refs = refs[:n_in], refs[n_in:]

    x = in_refs[0][0].astype(jnp.float32)                        # (Cin, L)
    for li in range(n_layers):
        w_all = in_refs[1 + 4 * li][...]                         # (ch, cin*NT)
        b_sum = in_refs[2 + 4 * li][...]                         # (ch, 1)
        wp = in_refs[3 + 4 * li][...]                            # (ch, 3*ch)
        bp = in_refs[4 + 4 * li][...]                            # (ch, 1)
        offsets, pad = layer_meta[li]

        cin = x.shape[0]
        # In-kernel 'same' padding: zero halo columns, no HBM round trip.
        if pad > 0:
            z = jnp.zeros((cin, pad), jnp.float32)
            xpad = jnp.concatenate([z, x, z], axis=1)            # (cin, L + 2*pad)
        else:
            xpad = x
        # All (conv, tap) shifted windows stacked on sublanes -> ONE matmul.
        xs = jnp.concatenate([xpad[:, o:o + L] for o in offsets], axis=0)
        y = jnp.dot(w_all, xs, preferred_element_type=jnp.float32) + b_sum

        # Post conv (kernel 3, padding 1), stride-1 here; stride applied outside.
        ch = y.shape[0]
        zc = jnp.zeros((ch, 1), jnp.float32)
        ypad = jnp.concatenate([zc, y, zc], axis=1)              # (ch, L+2)
        ys = jnp.concatenate([ypad[:, k:k + L] for k in range(3)], axis=0)
        a = jnp.dot(wp, ys, preferred_element_type=jnp.float32) + bp
        a = jnp.where(a >= 0, a, slope * a)                      # LeakyReLU(0.1)

        out_refs[li][0] = a
        x = a

    if has_final:
        wf = in_refs[n_in - 2][...]                              # (1, 3*cin)
        bf = in_refs[n_in - 1][...]                              # (1, 1)
        cin = x.shape[0]
        zc = jnp.zeros((cin, 1), jnp.float32)
        xpad = jnp.concatenate([zc, x, zc], axis=1)
        xs = jnp.concatenate([xpad[:, k:k + L] for k in range(3)], axis=0)
        s = jnp.dot(wf, xs, preferred_element_type=jnp.float32) + bf
        out_refs[n_layers][0] = s


def sbd_stage(x, layer_params, final_params=None, *, slope=0.1):
    """Run a fused stack of stride-1 MDC layers (+ optional final conv) on x."""
    B, Cin, L = x.shape
    nl = len(layer_params)

    inputs = [x.astype(jnp.float32)]
    in_specs = [pl.BlockSpec((1, Cin, L), lambda i: (i, 0, 0))]
    layer_meta, out_shapes, out_specs = [], [], []
    flops = 0
    for p in layer_params:
        ch = p["ch"]
        inputs += [p["w_all"], p["b_sum"], p["wp"], p["bp"]]
        in_specs += [
            pl.BlockSpec(p["w_all"].shape, lambda i: (0, 0)),
            pl.BlockSpec(p["b_sum"].shape, lambda i: (0, 0)),
            pl.BlockSpec(p["wp"].shape, lambda i: (0, 0)),
            pl.BlockSpec(p["bp"].shape, lambda i: (0, 0)),
        ]
        layer_meta.append((p["offsets"], p["pad"]))
        out_shapes.append(jax.ShapeDtypeStruct((B, ch, L), jnp.float32))
        out_specs.append(pl.BlockSpec((1, ch, L), lambda i: (i, 0, 0)))
        flops += 2 * ch * p["w_all"].shape[1] * L + 2 * ch * (3 * ch) * L
    if final_params is not None:
        wf, bf = final_params
        inputs += [wf, bf]
        in_specs += [pl.BlockSpec(wf.shape, lambda i: (0, 0)),
                     pl.BlockSpec(bf.shape, lambda i: (0, 0))]
        out_shapes.append(jax.ShapeDtypeStruct((B, 1, L), jnp.float32))
        out_specs.append(pl.BlockSpec((1, 1, L), lambda i: (i, 0, 0)))
        flops += 2 * wf.shape[1] * L

    in_bytes = sum(int(np.prod(a.shape)) * 4 for a in inputs)
    out_bytes = sum(int(np.prod(s.shape)) * 4 for s in out_shapes)

    kern = functools.partial(
        _sbd_stage_kernel, n_layers=nl, has_final=final_params is not None,
        layer_meta=tuple(layer_meta), L=L, slope=slope)

    return pl.pallas_call(
        kern,
        out_shape=tuple(out_shapes),
        grid=(B,),
        in_specs=in_specs,
        out_specs=tuple(out_specs),
        compiler_params=pltpu.CompilerParams(
            dimension_semantics=("parallel",),
            vmem_limit_bytes=_VMEM_LIMIT),
        cost_estimate=pl.CostEstimate(flops=int(B * flops), transcendentals=0,
                                      bytes_accessed=int(in_bytes + out_bytes)),
    )(*inputs)


# --------------------------------------------------------------------------- #
# PQMF analysis — polyphase, ONE matmul with contraction K = J*S per batch.   #
# --------------------------------------------------------------------------- #
def _design_prototype_filter(taps, cutoff, beta):
    idx = np.arange(taps + 1) - 0.5 * taps
    omega_c = np.pi * cutoff
    with np.errstate(invalid="ignore", divide="ignore"):
        h_i = np.sin(omega_c * idx) / (np.pi * idx)
    h_i[taps // 2] = cutoff
    return h_i * np.kaiser(taps + 1, beta)


def make_pqmf_packed_filters(subbands, taps, cutoff, beta):
    """Cosine-modulated Kaiser analysis bank, packed as (S, J*S) for one matmul."""
    h_proto = _design_prototype_filter(taps, cutoff, beta)
    t = np.arange(taps + 1) - taps / 2.0
    h = np.zeros((subbands, taps + 1), dtype=np.float64)
    for k in range(subbands):
        h[k] = 2.0 * h_proto * np.cos(
            (2 * k + 1) * (np.pi / (2 * subbands)) * t + ((-1) ** k) * np.pi / 4.0)
    K = taps + 1
    J = -(-K // subbands)                              # ceil(K / S)
    hpad = np.zeros((subbands, J * subbands))
    hpad[:, :K] = h                                    # column order == (j, r) packing
    return jnp.asarray(hpad, dtype=jnp.float32), J


def _pqmf_kernel(xq_ref, h_ref, o_ref, *, J, Tout):
    # xq_ref: (1, S, Lq) polyphase signal   h_ref: (S, J*S)   o_ref: (1, S, Tout)
    xq = xq_ref[0]
    # Stack the J shifted windows on sublanes -> a single K=J*S matmul.
    xs = jnp.concatenate([xq[:, j:j + Tout] for j in range(J)], axis=0)   # (J*S, Tout)
    o_ref[0] = jnp.dot(h_ref[...], xs, preferred_element_type=jnp.float32)


def pqmf_analysis(x, h_packed, subbands, taps, J):
    """x: (B, 1, T) -> (B, subbands, T//subbands), lane-dense on time."""
    B, _, T = x.shape
    S = subbands
    Tout = T // S
    pad = taps // 2
    Lq = max(-(-(T + taps) // S), Tout + J - 1)
    right = Lq * S - T - pad
    assert right >= 0, "PQMF right-pad must be non-negative"
    xpad = jnp.pad(x[:, 0, :], ((0, 0), (pad, right)))
    # Polyphase layout plumbing on the wrapper side (one cheap XLA pass).
    xq = jnp.transpose(xpad.reshape(B, Lq, S), (0, 2, 1)).astype(jnp.float32)

    kern = functools.partial(_pqmf_kernel, J=J, Tout=Tout)
    flops = 2 * S * (J * S) * Tout * B
    bytes_acc = (int(np.prod(xq.shape)) + int(np.prod(h_packed.shape)) + B * S * Tout) * 4
    return pl.pallas_call(
        kern,
        out_shape=jax.ShapeDtypeStruct((B, S, Tout), jnp.float32),
        grid=(B,),
        in_specs=[pl.BlockSpec((1, S, Lq), lambda i: (i, 0, 0)),
                  pl.BlockSpec((S, J * S), lambda i: (0, 0))],
        out_specs=pl.BlockSpec((1, S, Tout), lambda i: (i, 0, 0)),
        compiler_params=pltpu.CompilerParams(
            dimension_semantics=("parallel",),
            vmem_limit_bytes=_VMEM_LIMIT),
        cost_estimate=pl.CostEstimate(flops=int(flops), transcendentals=0,
                                      bytes_accessed=int(bytes_acc)),
    )(xq, h_packed)


# --------------------------------------------------------------------------- #
# Parameter construction (Conv1d-style uniform init), packed for the MXU.     #
# --------------------------------------------------------------------------- #
def init_conv(key, cin, cout, k):
    k1, k2 = jax.random.split(key)
    bound = 1.0 / math.sqrt(cin * k)
    w = jax.random.uniform(k1, (cout, cin, k), minval=-bound, maxval=bound, dtype=jnp.float32)
    b = jax.random.uniform(k2, (cout,), minval=-bound, maxval=bound, dtype=jnp.float32)
    return w, b


def init_mdc(key, in_ch, ch, kernel, stride, dilations):
    keys = jax.random.split(key, len(dilations) + 1)
    ws, bs = [], []
    for i in range(len(dilations)):
        w, b = init_conv(keys[i], in_ch, ch, kernel)
        ws.append(w)
        bs.append(b)
    wp, bp = init_conv(keys[-1], ch, ch, 3)

    pads = [get_padding(kernel, d) for d in dilations]
    pmax = max(pads)
    # offset of tap k of conv i inside the common pmax-padded input.
    offsets = tuple(pmax - pads[i] + k * d
                    for i, d in enumerate(dilations) for k in range(kernel))
    w_all = jnp.concatenate(
        [ws[i][:, :, k] for i in range(len(dilations)) for k in range(kernel)], axis=1)
    wp_all = jnp.concatenate([wp[:, :, k] for k in range(3)], axis=1)
    # The provided module sums raw conv outputs (no per-conv activation), so
    # pre-summing the per-conv biases is exact.
    return {"w_all": w_all, "b_sum": sum(bs).reshape(ch, 1),
            "wp": wp_all, "bp": bp.reshape(ch, 1),
            "offsets": offsets, "pad": int(pmax), "stride": int(stride), "ch": int(ch)}


def init_sbd(key, init_channel, channels, kernel, strides, dilations):
    keys = jax.random.split(key, len(channels) + 1)
    mdcs, ic = [], init_channel
    for i, (c, s, d) in enumerate(zip(channels, strides, dilations)):
        mdcs.append(init_mdc(keys[i], ic, c, kernel, s, list(d)))
        ic = c
    wq, bq = init_conv(keys[-1], ic, 1, 3)
    w_post = jnp.concatenate([wq[:, :, k] for k in range(3)], axis=1)
    return {"mdcs": mdcs, "post_w": w_post, "post_b": bq.reshape(1, 1)}


# --------------------------------------------------------------------------- #
# Forward passes: fused stages, stride-3 decimation as an XLA slice between.  #
# --------------------------------------------------------------------------- #
def sbd_forward(x, p):
    fmap = []
    mdcs = p["mdcs"]
    final = (p["post_w"], p["post_b"])
    nl = len(mdcs)
    score = None
    i = 0
    while i < nl:
        j = i
        while j < nl and mdcs[j]["stride"] == 1:
            j += 1
        if j >= nl:
            # Remaining layers are all stride-1: fuse them + the final score conv.
            outs = sbd_stage(x, mdcs[i:nl], final)
            fmap.extend(outs[:-1])
            score = outs[-1]
            i = nl
        else:
            # Fuse layers i..j (j is the strided one); decimate its output outside.
            outs = sbd_stage(x, mdcs[i:j + 1], None)
            fmap.extend(outs[:-1])
            s = mdcs[j]["stride"]
            dec = outs[-1][:, :, ::s]          # cheap XLA strided slice (tiny tensor)
            fmap.append(dec)
            x = dec
            i = j + 1
    if score is None:                          # last MDC layer was strided
        outs = sbd_stage(x, [], final)
        score = outs[-1]
    return score.reshape(score.shape[0], -1), fmap


def msbd_forward(x, params, cfg):
    all_scores, all_fmaps = [], []
    # Time branch: PQMF(n) emitted lane-dense as (B, n, T//n).
    xn = pqmf_analysis(x, params["h_n"], cfg["n"], cfg["taps"], params["J_n"])
    for tsdb_p, tsub in zip(params["tsdbs"], cfg["tsubbands"]):
        s, f = sbd_forward(xn[:, :tsub, :], tsdb_p)
        all_scores.append(s)
        all_fmaps.extend(f)
    # Frequency branch: rearrange 'b s t -> b t s' (tiny tensor).
    xm = jnp.transpose(
        pqmf_analysis(x, params["h_m"], cfg["m"], cfg["taps"], params["J_m"]), (0, 2, 1))
    s, f = sbd_forward(xm, params["fsbd"])
    all_scores.append(s)
    all_fmaps.extend(f)
    return all_scores, all_fmaps


if __name__ == "__main__":
    # Small, self-consistent configuration (C = 1).
    C = 1
    B, T = 2, 256
    n, m, taps = 16, 64, 256
    freq_init_ch = T // m                            # fsbd input channels = T/m = 4

    tkernels = [7, 5, 3]
    tchannels = [4 * C, 8 * C, 16 * C, 16 * C, 16 * C]
    tstrides = [1, 1, 3, 3, 1]
    tdilations = [[5, 7, 11], [3, 5, 7], [1, 2, 3]]   # one list per tsdb, repeated per MDC
    tsubbands = [6, 11, 16]

    fchannels = [2 * C, 4 * C, 8 * C, 8 * C, 8 * C]
    fstride = [1, 1, 3, 3, 1]
    fdilations = [[1, 2, 3], [1, 2, 3], [1, 2, 3], [2, 3, 5], [2, 3, 5]]

    key = jax.random.PRNGKey(0)
    kx, k0, k1, k2, k3 = jax.random.split(key, 5)

    h_n, J_n = make_pqmf_packed_filters(n, taps, 0.03, 10.0)
    h_m, J_m = make_pqmf_packed_filters(m, taps, 0.1, 9.0)
    params = {
        "h_n": h_n, "J_n": J_n, "h_m": h_m, "J_m": J_m,
        "tsdbs": [
            init_sbd(kk, tsubbands[i], tchannels, tkernels[i], tstrides,
                     [tdilations[i]] * len(tchannels))
            for i, kk in enumerate([k0, k1, k2])
        ],
        "fsbd": init_sbd(k3, freq_init_ch, fchannels, 5, fstride, fdilations),
    }
    cfg = {"n": n, "m": m, "taps": taps, "tsubbands": tsubbands}

    x = jax.random.normal(kx, (B, 1, T), dtype=jnp.float32)

    scores, fmaps = msbd_forward(x, params, cfg)
    jax.block_until_ready(scores)
    jax.block_until_ready(fmaps)

    assert len(scores) == 4, len(scores)
    assert len(fmaps) == 20, len(fmaps)
    assert all(s.ndim == 2 and s.shape[0] == B for s in scores)
    assert all(f.ndim == 3 and f.shape[0] == B for f in fmaps)
    print("KERNEL_OK")
</pallas_src>

<mosaic_0001>
module attributes {stable_mosaic.version = 11 : i64} {
  func.func @_pqmf_kernel(%arg0: i32, %arg1: memref<1x16x32xf32, #tpu.memory_space<vmem>>, %arg2: memref<16x272xf32, #tpu.memory_space<vmem>>, %arg3: memref<1x16x16xf32, #tpu.memory_space<vmem>>) attributes {dimension_semantics = [#tpu.dimension_semantics<parallel>], iteration_bounds = array<i64: 2>, scalar_prefetch = 0 : i64, scratch_operands = 0 : i64, tpu.core_type = #tpu.core_type<tc>, window_params = [{transform_indices = @transform_0, window_bounds = array<i64: 1, 16, 32>}, {pipeline_mode = #tpu.pipeline_mode<synchronous>, transform_indices = @transform_1, window_bounds = array<i64: 16, 272>}, {transform_indices = @transform_2, window_bounds = array<i64: 1, 16, 16>}]} {
    %c0 = arith.constant 0 : index
    %c0_0 = arith.constant 0 : index
    %c0_1 = arith.constant 0 : index
    %0 = vector.load %arg1[%c0, %c0_0, %c0_1] : memref<1x16x32xf32, #tpu.memory_space<vmem>>, vector<1x16x32xf32>
    %1 = vector.shape_cast %0 : vector<1x16x32xf32> to vector<16x32xf32>
    %2 = vector.extract_strided_slice %1 {offsets = [0, 0], sizes = [16, 16], strides = [1, 1]} : vector<16x32xf32> to vector<16x16xf32>
    %3 = vector.extract_strided_slice %1 {offsets = [0, 1], sizes = [16, 16], strides = [1, 1]} : vector<16x32xf32> to vector<16x16xf32>
    %4 = vector.extract_strided_slice %1 {offsets = [0, 2], sizes = [16, 16], strides = [1, 1]} : vector<16x32xf32> to vector<16x16xf32>
    %5 = vector.extract_strided_slice %1 {offsets = [0, 3], sizes = [16, 16], strides = [1, 1]} : vector<16x32xf32> to vector<16x16xf32>
    %6 = vector.extract_strided_slice %1 {offsets = [0, 4], sizes = [16, 16], strides = [1, 1]} : vector<16x32xf32> to vector<16x16xf32>
    %7 = vector.extract_strided_slice %1 {offsets = [0, 5], sizes = [16, 16], strides = [1, 1]} : vector<16x32xf32> to vector<16x16xf32>
    %8 = vector.extract_strided_slice %1 {offsets = [0, 6], sizes = [16, 16], strides = [1, 1]} : vector<16x32xf32> to vector<16x16xf32>
    %9 = vector.extract_strided_slice %1 {offsets = [0, 7], sizes = [16, 16], strides = [1, 1]} : vector<16x32xf32> to vector<16x16xf32>
    %10 = vector.extract_strided_slice %1 {offsets = [0, 8], sizes = [16, 16], strides = [1, 1]} : vector<16x32xf32> to vector<16x16xf32>
    %11 = vector.extract_strided_slice %1 {offsets = [0, 9], sizes = [16, 16], strides = [1, 1]} : vector<16x32xf32> to vector<16x16xf32>
    %12 = vector.extract_strided_slice %1 {offsets = [0, 10], sizes = [16, 16], strides = [1, 1]} : vector<16x32xf32> to vector<16x16xf32>
    %13 = vector.extract_strided_slice %1 {offsets = [0, 11], sizes = [16, 16], strides = [1, 1]} : vector<16x32xf32> to vector<16x16xf32>
    %14 = vector.extract_strided_slice %1 {offsets = [0, 12], sizes = [16, 16], strides = [1, 1]} : vector<16x32xf32> to vector<16x16xf32>
    %15 = vector.extract_strided_slice %1 {offsets = [0, 13], sizes = [16, 16], strides = [1, 1]} : vector<16x32xf32> to vector<16x16xf32>
    %16 = vector.extract_strided_slice %1 {offsets = [0, 14], sizes = [16, 16], strides = [1, 1]} : vector<16x32xf32> to vector<16x16xf32>
    %17 = vector.extract_strided_slice %1 {offsets = [0, 15], sizes = [16, 16], strides = [1, 1]} : vector<16x32xf32> to vector<16x16xf32>
    %18 = vector.extract_strided_slice %1 {offsets = [0, 16], sizes = [16, 16], strides = [1, 1]} : vector<16x32xf32> to vector<16x16xf32>
    %19 = tpu.concatenate %2, %3, %4, %5, %6, %7, %8, %9, %10, %11, %12, %13, %14, %15, %16, %17 in 0 : vector<16x16xf32>, vector<16x16xf32>, vector<16x16xf32>, vector<16x16xf32>, vector<16x16xf32>, vector<16x16xf32>, vector<16x16xf32>, vector<16x16xf32>, vector<16x16xf32>, vector<16x16xf32>, vector<16x16xf32>, vector<16x16xf32>, vector<16x16xf32>, vector<16x16xf32>, vector<16x16xf32>, vector<16x16xf32> -> vector<256x16xf32>
    %20 = tpu.concatenate %19, %18 in 0 : vector<256x16xf32>, vector<16x16xf32> -> vector<272x16xf32>
    %c0_2 = arith.constant 0 : index
    %c0_3 = arith.constant 0 : index
    %21 = vector.load %arg2[%c0_2, %c0_3] : memref<16x272xf32, #tpu.memory_space<vmem>>, vector<16x272xf32>
    %cst = arith.constant dense<0.000000e+00> : vector<16x16xf32>
    %22 = tpu.matmul %21, %20, %cst {dimension_numbers = #tpu.dot_dimension_numbers<[1], [0], [0], [1], [0, 0, 1, 1], [], []>} : vector<16x272xf32>, vector<272x16xf32>, vector<16x16xf32> -> vector<16x16xf32>
    %c0_4 = arith.constant 0 : index
    %c0_5 = arith.constant 0 : index
    %c0_6 = arith.constant 0 : index
    %23 = vector.load %arg3[%c0_4, %c0_5, %c0_6] : memref<1x16x16xf32, #tpu.memory_space<vmem>>, vector<1x16x16xf32>
    %24 = vector.shape_cast %23 : vector<1x16x16xf32> to vector<16x16xf32>
    %25 = vector.shape_cast %22 : vector<16x16xf32> to vector<1x16x16xf32>
    tpu.vector_store %arg3[%c0_4, %c0_5, %c0_6], %25 {strides = array<i32>} : memref<1x16x16xf32, #tpu.memory_space<vmem>>, vector<1x16x16xf32>,
    return
  }
  func.func @transform_0(%arg0: i32) -> (i32, i32, i32) {
    %c0_i32 = arith.constant 0 : i32
    %c0_i32_0 = arith.constant 0 : i32
    %c0_i32_1 = arith.constant 0 : i32
    return %arg0, %c0_i32, %c0_i32_0 : i32, i32, i32
  }
  func.func @transform_1(%arg0: i32) -> (i32, i32) {
    %c0_i32 = arith.constant 0 : i32
    %c0_i32_0 = arith.constant 0 : i32
    %c0_i32_1 = arith.constant 0 : i32
    return %c0_i32, %c0_i32_0 : i32, i32
  }
  func.func @transform_2(%arg0: i32) -> (i32, i32, i32) {
    %c0_i32 = arith.constant 0 : i32
    %c0_i32_0 = arith.constant 0 : i32
    %c0_i32_1 = arith.constant 0 : i32
    return %arg0, %c0_i32, %c0_i32_0 : i32, i32, i32
  }
}

</mosaic_0001>

<bundles_post_ra>
// kernel: tpu_custom_call.1
= control target key start
LH: loop header
LB: loop body
LE: loop exit
PB: predicated region body
PF: predicated region fallthrough
CT: control target
= control target key end

     0   :  { %7 = vsyncpa [#allocation3], 0  ;;  %s987_s0 = inlined_call_operand.hbm [shape: f32[2,16,32], index: 0, kind: input, shape index: {}]   ;;  %s988_s1 = inlined_call_operand.hbm [shape: f32[16,272], index: 1, kind: input, shape index: {}]   ;;  %s989_s2 = inlined_call_operand.hbm [shape: f32[2,16,16], index: 2, kind: output, shape index: {}]  }
   0x1   :  { %9 = vsyncpa [#allocation3 + $0x1], 0 }
   0x2   :  { %10 = vsyncpa [#allocation6], 0 }
   0x3   :  { %11 = vsyncpa [#allocation4], 0 }
   0x4   :  { %13 = vsyncpa [#allocation4 + $0x1], 0  ;;  %s829_s9 = smov 0   ;;  %s831_s10 = smov 0  }
   0x5   :  { %s833_s11 = smov 0   ;;  %s835_s12 = smov 0  }
   0x6 LB: > { %s850_s13 = sadd.s32 4294967295, %s789_s12   ;;  %s464_s14 = sadd.s32 4294967294, %s789_s12   ;;  %s789_s12 = sphi %s835_s12, %s999_s12   ;;  %s785_s11 = sphi %s833_s11, %s998_s11   ;;  %s781_s10 = sphi %s831_s10, %s997_s10   ;;  %s777_s9 = sphi %s829_s9, %s996_s9  }
   0x7   : > { %p39_p0 = scmp.ne.s32.totalorder %s781_s10, %s777_s9  ;;  %p40_p1 = scmp.eq.s32.totalorder %s850_s13, 0 }
   0x8   : > { %p84_p2 = scmp.eq.s32.totalorder %s850_s13, 1  ;;  %p90_p3 = scmp.eq.s32.totalorder %s464_s14, 1 }
   0x9   : > { %p859_p4 = por %p40_p1, %p39_p0  ;;  %p465_p5 = scmp.ge.s32.totalorder %s789_s12, 1 }
   0xa   : > { %p864_p6 = por %p90_p3, %p39_p0  ;;  %p97_p7 = scmp.lt.s32.totalorder %s789_s12, 3 }
   0xb   : > { %s108_s19 = sshll.u32 %s988_s1, 4  ;;  %s791_s21 = smov [#allocation5]   ;;  %s109_s19 = int_to_ptr.hbm [resolvable:$true] %s108_s19 }
   0xc   : > { %p872_p8 = pnand %p465_p5, %p97_p7  ;;  %s110_s22 = sshll.u32 %s791_s21, 4  ;;  %s111_s22 = int_to_ptr.vmem [resolvable:$true] %s110_s22 }
   0xd   : > { %s882_s23 = sadd.s32 1, %s789_s12   ;;  %s792_s24 = smov 384  }
   0xe   : > { %p508_p9 = pneg %p872_p8  ;;  %s793_s25 = smov 24  }
   0xf   : > { %s23_s26 = ssub.s32 %s789_s12, %s882_s23  ;;  %s26_s27 = sadd.s32 1, %s785_s11 }
  0x10   : > { %p509_p10 = pnand %p508_p9, %p40_p1  ;;  %p24_p12 = scmp.eq.s32.totalorder %s23_s26, 0 }
  0x11   : > { %p33_p13 = scmp.ne.s32.totalorder %s785_s11, %s781_s10  ;;  %p34_p0 = scmp.eq.s32.totalorder %s789_s12, 0 }
  0x12   : > { %511 = dma.hbm_to_vmem [thread:$0]  (!%p509_p10), %s109_s19, 768, %s111_s22, [#allocation6], %s792_s24, %s792_s24, %s793_s25  }
  0x13   : > { %p521_p3 = scmp.lt.s32.totalorder %s789_s12, 2  ;;  %p35_p5 = por %p34_p0, %p33_p13 }
  0x14   : > { %s892_s28 = scalar_select %p24_p12, %s785_s11, %s26_s27  }
  0x15   : > { %p896_p7 = por %p84_p2, %p33_p13  ;;  %s124_s30 = sand.u32 1, %s785_s11  }
  0x16   : > { %s482_s3 = sshll.u32 %s789_s12, 4  ;;  %s468_s4 = sshll.u32 %s124_s30, 4 }
  0x17   : > { %s133_s7 = scalar_lea.hbm %s987_s0, %s482_s3  ;;  %s128_s14 = scalar_lea.vmem [#allocation2], %s468_s4 }
  0x18   : > { %s134_s8 = sshll.u32 %s133_s7, 4  ;;  %s136_s17 = sshll.u32 %s128_s14, 4  ;;  %s135_s8 = int_to_ptr.hbm [resolvable:$true] %s134_s8  ;;  %s137_s17 = int_to_ptr.vmem [resolvable:$true] %s136_s17 }
  0x19   : > { %p907_p9 = pnand %p521_p3, %p35_p5  ;;  %s125_s19 = scalar_lea.sflag [#allocation3], %s124_s30 }
  0x1a   : > { %s689_s21 = sshra.s32 %s135_s8, 4  ;;  %s696_s26 = scalar_lea.hbm %s987_s0, 32  ;;  %s690_s21 = int_to_ptr.hbm [resolvable:$true] %s689_s21 }
  0x1b   : > { %s691_s22 = scalar_lea.hbm %s690_s21, 16  ;;  %p693_p10 = pneg %p907_p9 }
  0x1c   : > { %p692_p2 = scmp.ne.s32.totalorder %s690_s21, %s691_s22  ;;  %p697_p0 = scmp.lt.s32.totalorder %s690_s21, %s987_s0 }
  0x1d   : > { %p698_p3 = scmp.lt.s32.totalorder %s696_s26, %s691_s22 }
  0x1e   : > { %p694_p12 = pnand %p693_p10, %p692_p2 }
  0x1f   : > { %p699_p5 = por %p698_p3, %p697_p0 }
  0x20   : > { %p695_p13 = pneg %p694_p12 }
  0x22   : > { %p700_p11 = pnand %p699_p5, %p695_p13 }
  0x24   : > { %703 = shalt.err (!%p700_p11)
}
  0x25   : > { %s794_s30 = smov 128   ;;  %s795_s4 = smov 8  }
  0x26   : > { %515 = dma.hbm_to_vmem [thread:$0]  (!%p907_p9), %s135_s8, 256, %s137_s17, %s125_s19, %s794_s30, %s794_s30, %s795_s4  }
  0x27   : > { %148 = sbr.rel (%p872_p8) target bundleno = 352 (0x160), region = 28  ;;  %s924_s5 = sand.u32 (!%p872_p8), 1, %s781_s10  }
  0x28   : > { %s472_s6 = sshll.u32 (!%p872_p8), %s924_s5, 4  ;;  %s151_s7 = scalar_lea.sflag (!%p872_p8), [#allocation3], %s924_s5 }
  0x29   : > { %s154_s14 = scalar_lea.vmem (!%p872_p8), [#allocation2], %s472_s6 }
  0x2c   : > { %764 = dma.done.wait (%p859_p4), %s151_s7, 256  }
  0x2d   : > { %766 = vsyncadd (%p859_p4), %s151_s7, 4294967040 }
  0x2e   : > { %768 = dma.done.wait (%p40_p1), [#allocation6], 768  }
  0x2f   : > { %770 = vsyncadd (%p40_p1), [#allocation6], 4294966528  ;;  %v938_v0 = vld [vmem:[%s154_s14] sm:$0xff]  ;;  %v940_v1 = vld [vmem:[%s154_s14 + $0x8] sm:$0xff]  ;;  %s796_s20 = smov 113   ;;  %s797_s8 = smov 114  }
  0x30   : > { %v579_v2 = vpack.i.bf16 %v938_v0, %v940_v1  ;;  %s798_s17 = smov 115   ;;  %s799_s15 = smov 121   ;;  %v283_v48 = vld [vmem:[#allocation5 + $0x10] sm:$0xff]  ;;  %vm287_vm0 = vcmask 130048   ;;  %v281_v50 = vld [vmem:[#allocation5] sm:$0xff]  ;;  %v284_v52 = vld [vmem:[#allocation5 + $0x18] sm:$0xff] }
  0x31   : > { %s800_s18 = smov 122   ;;  %s801_s19 = smov 123   ;;  %v282_v54 = vld [vmem:[#allocation5 + $0x8] sm:$0xff]  ;;  %v285_v56 = vld [vmem:[#allocation5 + $0x20] sm:$0xff] }
  0x32   : > { %580 = vrot.lane.b32.xlu0 %v579_v2, %s796_s20  ;;  %590 = vrot.lane.b32.xlu1 %v579_v2, %s797_s8  ;;  %s802_s21 = smov 116   ;;  %s803_s22 = smov 124   ;;  %v286_v55 = vld [vmem:[#allocation5 + $0x28] sm:$0xff] }
  0x33   : > { %600 = vrot.lane.b32.xlu2 %v579_v2, %s798_s17  ;;  %s804_s24 = smov 117   ;;  %s805_s25 = smov 125  }
  0x34   : > { %s806_s26 = smov 118   ;;  %s807_s27 = smov 126  }
  0x35   : > { %s808_s3 = smov 119   ;;  %s809_s30 = smov 112  }
  0x36   : > { %s810_s4 = smov 127   ;;  %s811_s7 = smov 120  }
  0x37   : > { %s483_s14 = sshll.u32 %s850_s13, 4  ;;  %s366_s13 = scalar_lea.sflag [#allocation4], %s924_s5 }
  0x38   : > { %s377_s17 = scalar_lea.hbm %s989_s2, %s483_s14 }
  0x3a   : > { %585 = vrot.lane.b32.xlu0 %v579_v2, %s799_s15  ;;  %595 = vrot.lane.b32.xlu1 %v579_v2, %s800_s18  ;;  %s180_s15 = scalar_lea.vmem [#allocation7], %s472_s6 }
  0x3b   : > { %605 = vrot.lane.b32.xlu2 %v579_v2, %s801_s19  ;;  %s378_s18 = sshll.u32 %s180_s15, 4  ;;  %s380_s19 = sshll.u32 %s377_s17, 4  ;;  %s379_s18 = int_to_ptr.vmem [resolvable:$true] %s378_s18  ;;  %s381_s19 = int_to_ptr.hbm [resolvable:$true] %s380_s19 }
  0x42   : > { %610 = vrot.lane.b32.xlu0 %v579_v2, %s802_s21  ;;  %615 = vrot.lane.b32.xlu1 %v579_v2, %s803_s22  ;;  %s733_s21 = sshra.s32 %s381_s19, 4  ;;  %s734_s21 = int_to_ptr.hbm [resolvable:$true] %s733_s21 }
  0x43   : > { %620 = vrot.lane.b32.xlu2 %v579_v2, %s804_s24  ;;  %s735_s22 = scalar_lea.hbm %s734_s21, 16  ;;  %p740_p11 = scmp.lt.s32.totalorder %s734_s21, %s989_s2 }
  0x44   : > { %p736_p1 = scmp.ne.s32.totalorder %s734_s21, %s735_s22 }
  0x46   : > { %p737_p4 = pnand %p736_p1, %p896_p7 }
  0x48   : > { %p738_p8 = pneg %p737_p4 }
  0x4a   : > { %625 = vrot.lane.b32.xlu0 %v579_v2, %s805_s25  ;;  %630 = vrot.lane.b32.xlu1 %v579_v2, %s806_s26  ;;  %s739_s25 = scalar_lea.hbm %s989_s2, 32 }
  0x4b   : > { %635 = vrot.lane.b32.xlu2 %v579_v2, %s807_s27  ;;  %p741_p9 = scmp.lt.s32.totalorder %s739_s25, %s735_s22 }
  0x4d   : > { %p742_p2 = por %p741_p9, %p740_p11 }
  0x4f   : > { %p743_p10 = pnand %p742_p2, %p738_p8 }
  0x52   : > { %640 = vrot.lane.b32.xlu0 %v579_v2, %s808_s3  ;;  %645 = vrot.lane.b32.xlu1 %v579_v2, %s809_s30 }
  0x53   : > { %650 = vrot.lane.b32.xlu2 %v579_v2, %s810_s4 }
  0x5a   : > { %655 = vrot.lane.b32.xlu0 %v579_v2, %s811_s7 }
  0x8d   : > { %v601_v3 = vpop.permute.xlu2 %600 }
  0x8e   : > { %v602_v15 = vunpack.i.l.bf16 %v601_v3  ;;  %v603_v18 = vunpack.i.h.bf16 %v601_v3 }
  0x95   : > { %v606_v4 = vpop.permute.xlu2 %605 }
  0x96   : > { %v607_v22 = vunpack.i.l.bf16 %v606_v4  ;;  %v608_v24 = vunpack.i.h.bf16 %v606_v4 }
  0x9d   : > { %v621_v14 = vpop.permute.xlu2 %620 }
  0x9e   : > { %v622_v28 = vunpack.i.l.bf16 %v621_v14  ;;  %v623_v29 = vunpack.i.h.bf16 %v621_v14 }
  0xa4   : > { %v581_v5 = vpop.permute.xlu0 %580  ;;  %v591_v6 = vpop.permute.xlu1 %590 }
  0xa5   : > { %v582_v7 = vunpack.i.l.bf16 %v581_v5  ;;  %v583_v8 = vunpack.i.h.bf16 %v581_v5  ;;  %v592_v9 = vunpack.i.l.bf16 %v591_v6  ;;  %v593_v10 = vunpack.i.h.bf16 %v591_v6  ;;  %v636_v26 = vpop.permute.xlu2 %635 }
  0xa6   : > { %v637_v37 = vunpack.i.l.bf16 %v636_v26  ;;  %v638_v38 = vunpack.i.h.bf16 %v636_v26 }
  0xa7   : > { %317 = vmatpush.msra.mxu1 %v582_v7 }
  0xa9   : > { %318 = vmatpush.msra.mxu1 %v583_v8 }
  0xab   : > { %319 = vmatpush.msra.mxu1 %v592_v9 }
  0xac   : > { %v586_v11 = vpop.permute.xlu0 %585  ;;  %v596_v12 = vpop.permute.xlu1 %595 }
  0xad   : > { %320 = vmatpush.msra.mxu1 %v593_v10  ;;  %v587_v13 = vunpack.i.l.bf16 %v586_v11  ;;  %v588_v16 = vunpack.i.h.bf16 %v586_v11  ;;  %v597_v17 = vunpack.i.l.bf16 %v596_v12  ;;  %v598_v19 = vunpack.i.h.bf16 %v596_v12  ;;  %v651_v39 = vpop.permute.xlu2 %650 }
  0xae   : > { %v652_v42 = vunpack.i.l.bf16 %v651_v39  ;;  %v653_v46 = vunpack.i.h.bf16 %v651_v39 }
  0xaf   : > { %294 = vmatpush.msra.mxu0 %v587_v13  ;;  %484 = vmatpush.msra.mxu3 %v587_v13 }
  0xb0   : > { %321 = vmatpush.msra.mxu1 %v602_v15 }
  0xb1   : > { %295 = vmatpush.msra.mxu0 %v588_v16  ;;  %485 = vmatpush.msra.mxu3 %v588_v16 }
  0xb2   : > { %322 = vmatpush.msra.mxu1 %v603_v18 }
  0xb3   : > { %296 = vmatpush.msra.mxu0 %v597_v17  ;;  %486 = vmatpush.msra.mxu3 %v597_v17 }
  0xb4   : > { %v611_v20 = vpop.permute.xlu0 %610  ;;  %v616_v21 = vpop.permute.xlu1 %615 }
  0xb5   : > { %297 = vmatpush.msra.mxu0 %v598_v19  ;;  %487 = vmatpush.msra.mxu3 %v598_v19  ;;  %v612_v23 = vunpack.i.l.bf16 %v611_v20  ;;  %v617_v25 = vunpack.i.l.bf16 %v616_v21  ;;  %v613_v27 = vunpack.i.h.bf16 %v611_v20  ;;  %v618_v30 = vunpack.i.h.bf16 %v616_v21 }
  0xb7   : > { %298 = vmatpush.msra.mxu0 %v607_v22  ;;  %488 = vmatpush.msra.mxu3 %v607_v22 }
  0xb8   : > { %323 = vmatpush.msra.mxu1 %v612_v23 }
  0xb9   : > { %299 = vmatpush.msra.mxu0 %v608_v24  ;;  %489 = vmatpush.msra.mxu3 %v608_v24 }
  0xba   : > { %324 = vmatpush.msra.mxu1 %v613_v27 }
  0xbb   : > { %300 = vmatpush.msra.mxu0 %v617_v25  ;;  %490 = vmatpush.msra.mxu3 %v617_v25 }
  0xbc   : > { %325 = vmatpush.msra.mxu1 %v622_v28  ;;  %v626_v31 = vpop.permute.xlu0 %625  ;;  %v631_v32 = vpop.permute.xlu1 %630 }
  0xbd   : > { %301 = vmatpush.msra.mxu0 %v618_v30  ;;  %491 = vmatpush.msra.mxu3 %v618_v30  ;;  %v627_v33 = vunpack.i.l.bf16 %v626_v31  ;;  %v632_v34 = vunpack.i.l.bf16 %v631_v32  ;;  %v633_v35 = vunpack.i.h.bf16 %v631_v32  ;;  %v628_v36 = vunpack.i.h.bf16 %v626_v31 }
  0xbe   : > { %326 = vmatpush.msra.mxu1 %v623_v29 }
  0xbf   : > { %302 = vmatpush.msra.mxu0 %v627_v33  ;;  %492 = vmatpush.msra.mxu3 %v627_v33 }
  0xc0   : > { %327 = vmatpush.msra.mxu1 %v632_v34 }
  0xc1   : > { %303 = vmatpush.msra.mxu0 %v628_v36  ;;  %493 = vmatpush.msra.mxu3 %v628_v36 }
  0xc2   : > { %328 = vmatpush.msra.mxu1 %v633_v35 }
  0xc3   : > { %304 = vmatpush.msra.mxu0 %v637_v37  ;;  %494 = vmatpush.msra.mxu3 %v637_v37 }
  0xc4   : > { %v641_v40 = vpop.permute.xlu0 %640  ;;  %v646_v41 = vpop.permute.xlu1 %645 }
  0xc5   : > { %305 = vmatpush.msra.mxu0 %v638_v38  ;;  %495 = vmatpush.msra.mxu3 %v638_v38  ;;  %v648_v43 = vunpack.i.h.bf16 %v646_v41  ;;  %v642_v44 = vunpack.i.l.bf16 %v641_v40  ;;  %v647_v45 = vunpack.i.l.bf16 %v646_v41  ;;  %v643_v47 = vunpack.i.h.bf16 %v641_v40 }
  0xc7   : > { %329 = vmatpush.msra.mxu1 %v642_v44  ;;  %354 = vmatpush.msra.mxu2 %v647_v45 }
  0xc8   : > { %306 = vmatpush.msra.mxu0 %v652_v42  ;;  %496 = vmatpush.msra.mxu3 %v652_v42 }
  0xc9   : > { %330 = vmatpush.msra.mxu1 %v643_v47  ;;  %355 = vmatpush.msra.mxu2 %v648_v43 }
  0xca   : > { %307 = vmatpush.msra.mxu0 %v653_v46  ;;  %497 = vmatpush.msra.mxu3 %v653_v46 }
  0xcb   : > { %475 = vmatmul.msk.f32.vlgmr.msra.gmra.mxu2 %vm287_vm0, %v283_v48 }
  0xcc   : > { %v656_v49 = vpop.permute.xlu0 %655  ;;  %308 = vmatpush.msra.mxu0 %v940_v1  ;;  %498 = vmatpush.msra.mxu3 %v940_v1 }
  0xcd   : > { %v657_v51 = vunpack.i.l.bf16 %v656_v49  ;;  %v658_v53 = vunpack.i.h.bf16 %v656_v49 }
  0xce   : > { %309 = vmatpush.msra.mxu0 %v938_v0  ;;  %499 = vmatpush.msra.mxu3 %v938_v0 }
  0xcf   : > { %331 = vmatpush.msra.mxu1 %v657_v51  ;;  %310 = vmatmul.f32.vlgmr.msra.gmra.mxu0 %v281_v50 }
  0xd0   : > { %313 = vmatmul.f32.vlgmr.msra.gmra.mxu3 %v284_v52 }
  0xd1   : > { %332 = vmatpush.msra.mxu1 %v658_v53 }
  0xd2   : > { %333 = vmatmul.f32.vlgmr.msra.gmra.mxu1 %v282_v54 }
  0xd3   : > { %476 = vmatmul.msk.f32.gmra.mxu2 %vm287_vm0, %v286_v55 }
  0xda   : > { %336 = vmatmul.f32.gmra.mxu1 %v285_v56 }
 0x14c   : > { %v311_v57 = vpop.f32.mrf.mxu0 }
 0x14e   : > { %v357_v58 = vpop.f32.mrf.mxu2 }
 0x14f   : > { %v334_v59 = vpop.f32.mrf.mxu1 }
 0x150   : > { %v335_v60 = vadd.f32 %v334_v59, %v311_v57 }
 0x152   : > { %v358_v61 = vadd.f32 %v357_v58, %v335_v60 }
 0x153   : > { %v314_v62 = vpop.f32.mrf.mxu3 }
 0x154   : > { %363 = vst.msk [vmem:[%s180_s15] sm:$0xff] %vm287_vm0, %v358_v61 }
 0x156   : > { %v360_v0 = vpop.f32.mrf.mxu2 }
 0x157   : > { %v337_v63 = vpop.f32.mrf.mxu1 }
 0x158   : > { %v338_v1 = vadd.f32 %v337_v63, %v314_v62 }
 0x15a   : > { %v361_v2 = vadd.f32 %v360_v0, %v338_v1 }
 0x15c   : > { %364 = vst.msk [vmem:[%s180_s15 + $0x8] sm:$0xff] %vm287_vm0, %v361_v2 }
 0x15d   : > { %746 = shalt.err (!%p743_p10)
}
 0x15e   : > { %s812_s5 = smov 128   ;;  %s813_s3 = smov 8  }
 0x15f   : > { %506 = dma.vmem_to_hbm [thread:$0]  (%p896_p7), %s379_s18, 256, %s381_s19, %s366_s13, %s812_s5, %s812_s5, %s813_s3  }
 0x160 PF: > { %s395_s30 = sand.u32 1, %s777_s9   ;;  %p995_p12 = scmp.ge.s32.totalorder %s789_s12, 2 }
 0x161   : > { %s396_s4 = scalar_lea.sflag [#allocation4], %s395_s30 }
 0x162   : > { %p517_p13 = pnand %p995_p12, %p864_p6 }
 0x164   : > { %p518_p0 = pneg %p517_p13 }
 0x166   : > { %772 = dma.done.wait (%p518_p0), %s396_s4, 256  }
 0x167   : > { %774 = vsyncadd (%p518_p0), %s396_s4, 4294967040  ;;  %p16_p3 = scmp.ge.s32.totalorder %s882_s23, 4   ;;  %s996_s9 = smov %s781_s10 }
 0x168   : > { %s997_s10 = smov %s785_s11  ;;  %s998_s11 = smov %s892_s28 }
 0x169   : > { %s999_s12 = smov %s882_s23  ;;  %18 = sbr.rel (!%p16_p3) target bundleno = 6 (0x6), region = 77 }
 0x16e   :  { %402 = vsyncpa [#allocation3], 1 }
 0x16f   :  { %404 = vsyncpa [#allocation3 + $0x1], 1 }
 0x170   :  { %405 = vsyncpa [#allocation6], 1 }
 0x171   :  { %406 = vsyncpa [#allocation4], 1 }
 0x172   :  { %408 = vsyncpa [#allocation4 + $0x1], 1 }

</bundles_post_ra>
